<compile_context>
chip_gen: v5e
topology: v5e:2x2
jax: 0.10.0
libtpu: 0.0.40
codegen_flags: <defaults>
</compile_context>

<pallas_src>
import jax
import jax.numpy as jnp
from jax import lax
from jax.experimental import pallas as pl
from jax.experimental.pallas import tpu as pltpu

_LANE = 128
_SUBLANE = 8


def _linear_kernel(x_ref, w_ref, b_ref, o_ref):
    # x_ref: (TILE_N, K_p)   w_ref: (OUT_p, K_p)  (PyTorch layout, untransposed)
    # b_ref: (1, OUT_p)      o_ref: (TILE_N, OUT_p)
    acc = lax.dot_general(
        x_ref[...], w_ref[...],
        dimension_numbers=(((1,), (1,)), ((), ())),   # contract K with K (no .T needed)
        preferred_element_type=jnp.float32,
    )
    o_ref[...] = (acc + b_ref[...]).astype(o_ref.dtype)


def node_apply_forward(h, weight, bias, *, tile_n=512):
    """h @ weight.T + bias via a tiled, pipelined Pallas TPU kernel.

    h:      (N, in_feats) float32
    weight: (out_feats, in_feats) float32  (PyTorch nn.Linear layout)
    bias:   (out_feats,) float32
    returns (N, out_feats) float32
    """
    n, in_feats = h.shape
    out_feats, in_feats_w = weight.shape
    assert in_feats == in_feats_w, "weight/in_feats mismatch"

    # Lane-dense padding of the feature dims (zeros are exact for the matmul).
    k_pad = (-in_feats) % _LANE
    o_pad = (-out_feats) % _LANE
    in_p = in_feats + k_pad
    out_p = out_feats + o_pad

    # Node-tile size: multiple of the sublane (8), capped by the (padded) N.
    n_rounded = ((n + _SUBLANE - 1) // _SUBLANE) * _SUBLANE
    tile_n = max(_SUBLANE, min(tile_n, n_rounded))
    tile_n = (tile_n // _SUBLANE) * _SUBLANE
    n_pad = (-n) % tile_n
    n_p = n + n_pad

    h_p = jnp.pad(h, ((0, n_pad), (0, k_pad))) if (n_pad or k_pad) else h
    w_p = jnp.pad(weight, ((0, o_pad), (0, k_pad))) if (o_pad or k_pad) else weight
    b_p = (jnp.pad(bias, (0, o_pad)) if o_pad else bias).reshape(1, out_p)

    grid = (n_p // tile_n,)
    itemsize = jnp.dtype(h.dtype).itemsize
    cost = pl.CostEstimate(
        flops=2 * n * in_feats * out_feats,
        transcendentals=0,
        bytes_accessed=(h.size + weight.size + bias.size + n * out_feats) * itemsize,
    )

    out = pl.pallas_call(
        _linear_kernel,
        out_shape=jax.ShapeDtypeStruct((n_p, out_p), h.dtype),
        grid_spec=pltpu.PrefetchScalarGridSpec(
            num_scalar_prefetch=0,
            grid=grid,
            in_specs=[
                pl.BlockSpec((tile_n, in_p), lambda i: (i, 0)),   # streamed node tile
                pl.BlockSpec((out_p, in_p), lambda i: (0, 0)),    # VMEM-resident weight
                pl.BlockSpec((1, out_p), lambda i: (0, 0)),       # VMEM-resident bias
            ],
            out_specs=pl.BlockSpec((tile_n, out_p), lambda i: (i, 0)),
        ),
        compiler_params=pltpu.CompilerParams(
            dimension_semantics=("parallel",),   # independent per node tile; shards 2 TCs on v7x
        ),
        cost_estimate=cost,
    )(h_p, w_p, b_p)

    if n_pad or o_pad:
        out = out[:n, :out_feats]
    return out


if __name__ == "__main__":
    # Small shapes consistent with the module: N nodes, in_feats -> out_feats.
    N, IN_FEATS, OUT_FEATS = 8, 32, 32

    key = jax.random.PRNGKey(0)
    k_h, k_w, k_b = jax.random.split(key, 3)

    # Deterministic params (matches nn.Linear's uniform(-1/sqrt(in), 1/sqrt(in)) range).
    bound = 1.0 / (IN_FEATS ** 0.5)
    h = jax.random.normal(k_h, (N, IN_FEATS), dtype=jnp.float32)
    weight = jax.random.uniform(k_w, (OUT_FEATS, IN_FEATS), dtype=jnp.float32,
                                minval=-bound, maxval=bound)
    bias = jax.random.uniform(k_b, (OUT_FEATS,), dtype=jnp.float32,
                              minval=-bound, maxval=bound)

    out = node_apply_forward(h, weight, bias)
    out = jax.block_until_ready(out)

    # Reference check in plain JAX.
    ref = h @ weight.T + bias
    assert out.shape == (N, OUT_FEATS)
    assert jnp.allclose(out, ref, atol=1e-5, rtol=1e-5)

    # Also exercise the tiled path (N not a multiple of the tile, multi-step grid).
    N2 = 1030
    h2 = jax.random.normal(jax.random.PRNGKey(1), (N2, IN_FEATS), dtype=jnp.float32)
    out2 = jax.block_until_ready(node_apply_forward(h2, weight, bias, tile_n=512))
    ref2 = h2 @ weight.T + bias
    assert out2.shape == (N2, OUT_FEATS)
    assert jnp.allclose(out2, ref2, atol=1e-5, rtol=1e-5)

    print("KERNEL_OK")
</pallas_src>

<mosaic_0001>
module attributes {stable_mosaic.version = 11 : i64} {
  func.func @_linear_kernel(%arg0: i32, %arg1: memref<8x128xf32, #tpu.memory_space<vmem>>, %arg2: memref<128x128xf32, #tpu.memory_space<vmem>>, %arg3: memref<1x128xf32, #tpu.memory_space<vmem>>, %arg4: memref<8x128xf32, #tpu.memory_space<vmem>>) attributes {dimension_semantics = [#tpu.dimension_semantics<parallel>], iteration_bounds = array<i64: 1>, scalar_prefetch = 0 : i64, scratch_operands = 0 : i64, tpu.core_type = #tpu.core_type<tc>, window_params = [{transform_indices = @transform_0, window_bounds = array<i64: 8, 128>}, {pipeline_mode = #tpu.pipeline_mode<synchronous>, transform_indices = @transform_1, window_bounds = array<i64: 128, 128>}, {pipeline_mode = #tpu.pipeline_mode<synchronous>, transform_indices = @transform_2, window_bounds = array<i64: 1, 128>}, {transform_indices = @transform_3, window_bounds = array<i64: 8, 128>}]} {
    %c0 = arith.constant 0 : index
    %c0_0 = arith.constant 0 : index
    %0 = vector.load %arg1[%c0, %c0_0] : memref<8x128xf32, #tpu.memory_space<vmem>>, vector<8x128xf32>
    %c0_1 = arith.constant 0 : index
    %c0_2 = arith.constant 0 : index
    %1 = vector.load %arg2[%c0_1, %c0_2] : memref<128x128xf32, #tpu.memory_space<vmem>>, vector<128x128xf32>
    %cst = arith.constant dense<0.000000e+00> : vector<8x128xf32>
    %2 = tpu.matmul %0, %1, %cst {dimension_numbers = #tpu.dot_dimension_numbers<[1], [1], [0], [0], [0, 0, 1, 0], [], []>} : vector<8x128xf32>, vector<128x128xf32>, vector<8x128xf32> -> vector<8x128xf32>
    %c0_3 = arith.constant 0 : index
    %c0_4 = arith.constant 0 : index
    %3 = vector.load %arg3[%c0_3, %c0_4] : memref<1x128xf32, #tpu.memory_space<vmem>>, vector<1x128xf32>
    %4 = vector.broadcast %3 : vector<1x128xf32> to vector<8x128xf32>
    %5 = arith.addf %2, %4 : vector<8x128xf32>
    %c0_5 = arith.constant 0 : index
    %c0_6 = arith.constant 0 : index
    %6 = vector.load %arg4[%c0_5, %c0_6] : memref<8x128xf32, #tpu.memory_space<vmem>>, vector<8x128xf32>
    tpu.vector_store %arg4[%c0_5, %c0_6], %5 {strides = array<i32>} : memref<8x128xf32, #tpu.memory_space<vmem>>, vector<8x128xf32>,
    return
  }
  func.func @transform_0(%arg0: i32) -> (i32, i32) {
    %c0_i32 = arith.constant 0 : i32
    %c0_i32_0 = arith.constant 0 : i32
    return %arg0, %c0_i32 : i32, i32
  }
  func.func @transform_1(%arg0: i32) -> (i32, i32) {
    %c0_i32 = arith.constant 0 : i32
    %c0_i32_0 = arith.constant 0 : i32
    %c0_i32_1 = arith.constant 0 : i32
    return %c0_i32, %c0_i32_0 : i32, i32
  }
  func.func @transform_2(%arg0: i32) -> (i32, i32) {
    %c0_i32 = arith.constant 0 : i32
    %c0_i32_0 = arith.constant 0 : i32
    %c0_i32_1 = arith.constant 0 : i32
    return %c0_i32, %c0_i32_0 : i32, i32
  }
  func.func @transform_3(%arg0: i32) -> (i32, i32) {
    %c0_i32 = arith.constant 0 : i32
    %c0_i32_0 = arith.constant 0 : i32
    return %arg0, %c0_i32 : i32, i32
  }
}

</mosaic_0001>

<bundles_post_ra>
// kernel: tpu_custom_call.1
= control target key start
LH: loop header
LB: loop body
LE: loop exit
PB: predicated region body
PF: predicated region fallthrough
CT: control target
= control target key end

     0   :  { %8 = vsyncpa [#allocation3], 0  ;;  %s226_s0 = inlined_call_operand.hbm [shape: f32[8,128], index: 0, kind: input, shape index: {}]   ;;  %s227_s1 = inlined_call_operand.hbm [shape: f32[128,128], index: 1, kind: input, shape index: {}]   ;;  %s228_s2 = inlined_call_operand.vmem [shape: f32[1,128], index: 2, kind: input, shape index: {}]   ;;  %s229_s3 = inlined_call_operand.hbm [shape: f32[8,128], index: 3, kind: output, shape index: {}]  }
   0x1   :  { %9 = vsyncpa [#allocation6], 0 }
   0x2   :  { %10 = vsyncpa [#allocation4], 0  ;;  %s16_s14 = sshll.u32 %s226_s0, 4  ;;  %s189_s15 = smov [#allocation2]   ;;  %s17_s14 = int_to_ptr.hbm [resolvable:$true] %s16_s14 }
   0x3   :  { %s18_s16 = sshll.u32 %s189_s15, 4  ;;  %s26_s19 = sshll.u32 %s227_s1, 4  ;;  %s19_s16 = int_to_ptr.vmem [resolvable:$true] %s18_s16  ;;  %s27_s19 = int_to_ptr.hbm [resolvable:$true] %s26_s19 }
   0x4   :  { %21 = dma.hbm_to_vmem [thread:$0]  %s17_s14, 128, %s19_s16, [#allocation3]  }
   0x5   :  { %s190_s20 = smov [#allocation5]   ;;  %s191_s22 = smov 128  }
   0x6   :  { %s28_s21 = sshll.u32 %s190_s20, 4  ;;  %s192_s23 = smov 8   ;;  %s29_s21 = int_to_ptr.vmem [resolvable:$true] %s28_s21 }
   0x7   :  { %34 = dma.hbm_to_vmem [thread:$0]  %s27_s19, 2048, %s29_s21, [#allocation6], %s191_s22, %s191_s22, %s192_s23  }
   0x8   :  { %183 = dma.done.wait [#allocation3], 128  }
   0x9   :  { %184 = vsyncadd [#allocation3], 4294967168 }
   0xa   :  { %185 = dma.done.wait [#allocation6], 2048  }
   0xb   :  { %186 = vsyncadd [#allocation6], 4294965248  ;;  %v61_v0 = vld [vmem:[#allocation5 + $0x78] sm:$0xff]  ;;  %v60_v1 = vld [vmem:[#allocation5 + $0x70] sm:$0xff]  ;;  %s193_s24 = smov [#allocation7]   ;;  %s94_s28 = sshll.u32 %s229_s3, 4  ;;  %s95_s28 = int_to_ptr.hbm [resolvable:$true] %s94_s28 }
   0xc   :  { %66 = vmatpush.xpose.msra.mxu0 %v61_v0  ;;  %v59_v2 = vld [vmem:[#allocation5 + $0x68] sm:$0xff]  ;;  %v58_v3 = vld [vmem:[#allocation5 + $0x60] sm:$0xff]  ;;  %v57_v4 = vld [vmem:[#allocation5 + $0x58] sm:$0xff]  ;;  %s92_s25 = sshll.u32 %s193_s24, 4  ;;  %s93_s25 = int_to_ptr.vmem [resolvable:$true] %s92_s25 }
   0xd   :  { %v56_v5 = vld [vmem:[#allocation5 + $0x50] sm:$0xff]  ;;  %v55_v6 = vld [vmem:[#allocation5 + $0x48] sm:$0xff]  ;;  %v54_v7 = vld [vmem:[#allocation5 + $0x40] sm:$0xff] }
   0xe   :  { %v53_v8 = vld [vmem:[#allocation5 + $0x38] sm:$0xff]  ;;  %v52_v9 = vld [vmem:[#allocation5 + $0x30] sm:$0xff]  ;;  %v51_v10 = vld [vmem:[#allocation5 + $0x28] sm:$0xff] }
   0xf   :  { %v50_v11 = vld [vmem:[#allocation5 + $0x20] sm:$0xff]  ;;  %v49_v12 = vld [vmem:[#allocation5 + $0x18] sm:$0xff]  ;;  %v48_v13 = vld [vmem:[#allocation5 + $0x10] sm:$0xff] }
  0x10   :  { %67 = vmatpush.xpose.msra.mxu0 %v60_v1  ;;  %v47_v14 = vld [vmem:[#allocation5 + $0x8] sm:$0xff]  ;;  %v46_v15 = vld [vmem:[#allocation5] sm:$0xff]  ;;  %v45_v16 = vld [vmem:[#allocation2] sm:$0xff] }
  0x11   :  { %v110_v17 = vld [vmem:[%s228_s2] ss:$0 sm:$0xff] }
  0x14   :  { %68 = vmatpush.xpose.msra.mxu0 %v59_v2 }
  0x18   :  { %69 = vmatpush.xpose.msra.mxu0 %v58_v3 }
  0x1c   :  { %70 = vmatpush.xpose.msra.mxu0 %v57_v4 }
  0x20   :  { %71 = vmatpush.xpose.msra.mxu0 %v56_v5 }
  0x24   :  { %72 = vmatpush.xpose.msra.mxu0 %v55_v6 }
  0x28   :  { %73 = vmatpush.xpose.msra.mxu0 %v54_v7 }
  0x2c   :  { %74 = vmatpush.xpose.msra.mxu0 %v53_v8 }
  0x30   :  { %75 = vmatpush.xpose.msra.mxu0 %v52_v9 }
  0x34   :  { %76 = vmatpush.xpose.msra.mxu0 %v51_v10 }
  0x38   :  { %77 = vmatpush.xpose.msra.mxu0 %v50_v11 }
  0x3c   :  { %78 = vmatpush.xpose.msra.mxu0 %v49_v12 }
  0x40   :  { %79 = vmatpush.xpose.msra.mxu0 %v48_v13 }
  0x44   :  { %80 = vmatpush.xpose.msra.mxu0 %v47_v14 }
  0x48   :  { %81 = vmatpush.xpose.msra.mxu0 %v46_v15 }
  0x4b   :  { %82 = vmatmul.f32.vlgmr.msra.gmra.mxu0 %v45_v16 }
  0xc8   :  { %v83_v18 = vpop.f32.mrf.mxu0 }
  0xc9   :  { %v84_v19 = vadd.f32 %v110_v17, %v83_v18 }
  0xcb   :  { %86 = vst [vmem:[#allocation7] sm:$0xff] %v84_v19 }
  0xcc   :  { %97 = dma.vmem_to_hbm [thread:$0]  %s93_s25, 128, %s95_s28, [#allocation4]  }
  0xcd   :  { %187 = dma.done.wait [#allocation4], 128  }
  0xce   :  { %188 = vsyncadd [#allocation4], 4294967168 }
  0xcf   :  { %102 = vsyncpa [#allocation3], 1 }
  0xd0   :  { %103 = vsyncpa [#allocation6], 1 }
  0xd1   :  { %104 = vsyncpa [#allocation4], 1 }

</bundles_post_ra>
